<compile_context>
chip_gen: v5e
topology: v5e:2x2
jax: 0.10.0
libtpu: 0.0.40
codegen_flags: <defaults>
</compile_context>

<pallas_src>
import jax
import jax.numpy as jnp
from jax.experimental import pallas as pl
from jax.experimental.pallas import tpu as pltpu


def convnet_kernel(x_ref, r1_ref, b1_ref, w2_ref, b2_ref,
                   wf1_ref, bf1_ref, wf2_ref, bf2_ref, o_ref):
    wd = r1_ref.dtype                     # matmul operand dtype (bf16)
    ew = b1_ref.dtype                     # elementwise dtype for h1/h2

    x = x_ref[...].astype(wd)             # (TB, L)

    # conv1 (1->C1, k=1) folded into block-diagonal R1; bias+ReLU in `ew`.
    h1 = jnp.maximum(
        jnp.dot(x, r1_ref[...], preferred_element_type=jnp.float32).astype(ew)
        + b1_ref[...], 0)                                           # (TB, L*C1)

    # conv2 (C1->C2, k=1) as one block-diagonal matmul; bias+ReLU in `ew`.
    h2 = jnp.maximum(
        jnp.dot(h1.astype(wd), w2_ref[...],
                preferred_element_type=jnp.float32).astype(ew)
        + b2_ref[...], 0)                                           # (TB, L*C2)

    # fc1 (NCW flatten folded into the weight column order); bias+tanh in f32.
    # H1 is zero-padded to 128 lanes (tanh(0)=0; matching zero rows in wf2).
    f1 = jnp.tanh(
        jnp.dot(h2.astype(wd), wf1_ref[...],
                preferred_element_type=jnp.float32) + bf1_ref[...])  # (TB, H1p)

    # fc2, output lane-padded to a multiple of 128 for unmasked stores;
    # stored in o_ref.dtype (bf16) to halve HBM writeback.
    o_ref[...] = (
        jnp.dot(f1.astype(wd), wf2_ref[...],
                preferred_element_type=jnp.float32) + bf2_ref[...]
    ).astype(o_ref.dtype)                                           # (TB, H2p)


def _round_up(n, m):
    return ((n + m - 1) // m) * m


def convnet_forward(x, params, *, weight_dtype=jnp.bfloat16,
                    elementwise_dtype=jnp.bfloat16,
                    out_store_dtype=jnp.bfloat16, block_b=None):
    """x: (B, L) float32; params in PyTorch layouts (see __main__)."""
    w1, b1, w2, b2, fc1_w, fc1_b, fc2_w, fc2_b = params
    B, L = x.shape
    C1 = w1.shape[0]          # 32
    C2 = w2.shape[0]          # 64
    H1 = fc1_w.shape[0]       # hidden_layers[1]
    H2 = fc2_w.shape[0]       # hidden_layers[2]
    assert fc1_w.shape[1] == C2 * L, "hidden_layers[0] must equal 64*L"

    # ---- Batch tiling ------------------------------------------------------
    # Big tiles amortize the ~0.35 us fixed per-grid-step overhead.  TB=1024
    # keeps the per-step VMEM footprint ~7 MiB (safe on v7x's 64 MiB VMEM and
    # well under the explicit limit below).  `block_b` is the sweep knob.
    if block_b is None:
        TB = min(1024, _round_up(max(B, 8), 8))
        # v7x megacore: a batch big enough to split should use >= 2 grid steps
        # so the "parallel" axis covers both TensorCores (no-op on v5e/v6e).
        if B >= 256 and _round_up(B, TB) == TB:
            TB = _round_up((B + 1) // 2, 8)
    else:
        TB = _round_up(block_b, 8)
    Bp = _round_up(B, TB)

    H1p = _round_up(H1, 128)              # lane-dense fc1 output / fc2 LHS
    H2p = _round_up(H2, 128)              # lane-dense output width

    # ---- Wrapper-side weight prep (pure JAX, outside the kernel) -----------
    f32 = jnp.float32
    w1_row = w1.reshape(C1)[None, :].astype(f32)                # (1, C1)
    w2_m = w2.reshape(C2, C1).T.astype(f32)                     # (C1, C2)
    eye_l = jnp.eye(L, dtype=f32)

    r1 = jnp.kron(eye_l, w1_row)                                # (L, L*C1)
    b1_t = jnp.tile(b1.reshape(1, C1).astype(f32), (1, L))      # (1, L*C1)
    w2b = jnp.kron(eye_l, w2_m)                                 # (L*C1, L*C2)
    b2_t = jnp.tile(b2.reshape(1, C2).astype(f32), (1, L))      # (1, L*C2)

    # Fold the NCW flatten (torch flat index o*L + l) into fc1's weight so the
    # kernel's column order l*C2 + o matches:  wf1[l*C2+o, j] = fc1_w[j, o*L+l]
    wf1_core = (fc1_w.T.reshape(C2, L, H1).transpose(1, 0, 2)
                .reshape(L * C2, H1).astype(f32))               # (L*C2, H1)
    wf1 = jnp.zeros((L * C2, H1p), f32).at[:, :H1].set(wf1_core)
    bf1 = jnp.zeros((1, H1p), f32).at[:, :H1].set(fc1_b.reshape(1, H1))

    wf2 = jnp.zeros((H1p, H2p), f32).at[:H1, :H2].set(fc2_w.T.astype(f32))
    bf2 = jnp.zeros((1, H2p), f32).at[:, :H2].set(fc2_b.reshape(1, H2))

    # bf16 matmul operands (f32 accumulation in the kernel); conv biases in the
    # elementwise dtype so bias-add/ReLU run in bf16 on v6e/v7x.
    wd, ew = weight_dtype, elementwise_dtype

    # Padded batch rows compute relu(b1)/tanh(bias) garbage; they are sliced
    # off below — never read out[:Bp] directly.
    x_p = jnp.pad(x.astype(f32), ((0, Bp - B), (0, 0)))

    args = (x_p,
            r1.astype(wd), b1_t.astype(ew),
            w2b.astype(wd), b2_t.astype(ew),
            wf1.astype(wd), bf1,                 # fc1 bias/tanh stay f32
            wf2.astype(wd), bf2)

    grid = (Bp // TB,)
    in_specs = [pl.BlockSpec((TB, L), lambda i: (i, 0))] + [
        # Grid-invariant weights/biases: constant index_map -> no per-step
        # re-fetch, they stay VMEM-resident across the whole grid.
        pl.BlockSpec(a.shape, lambda i: (0, 0)) for a in args[1:]
    ]
    out_specs = pl.BlockSpec((TB, H2p), lambda i: (i, 0))

    # Real (non-kron-zero) FLOPs only — advisory for XLA's scheduler.
    flops = 2 * Bp * (L * C1 + L * C1 * C2 + (L * C2) * H1 + H1 * H2)
    bytes_accessed = (sum(int(a.size) * a.dtype.itemsize for a in args)
                      + Bp * H2p * jnp.dtype(out_store_dtype).itemsize)
    cost = pl.CostEstimate(flops=flops, transcendentals=Bp * H1,
                           bytes_accessed=bytes_accessed)

    # Explicit VMEM budget so `block_b` sweeps don't hit the scoped default
    # (16 MiB v5e / 32 MiB v6e,v7x): double-buffered x/out tiles and weights,
    # plus the f32 matmul results and ew-dtype activations, with 2x headroom.
    wd_b = jnp.dtype(wd).itemsize
    ew_b = jnp.dtype(ew).itemsize
    out_b = jnp.dtype(out_store_dtype).itemsize
    weight_elems = (L * (L * C1) + (L * C1) * (L * C2)
                    + (L * C2) * H1p + H1p * H2p)
    est = (2 * (weight_elems * wd_b + (L * C1 + L * C2) * ew_b
                + (H1p + H2p) * 4)                       # weights (x2 buffers)
           + 2 * TB * (L * 4 + H2p * out_b)              # x/out tiles (x2)
           + TB * ((L * C1 + L * C2 + H1p + H2p) * 4     # f32 matmul results
                   + (L * C1 + L * C2) * ew_b + H1p * wd_b))
    vmem_limit = int(min(max(2 * est, 24 << 20), 48 << 20))

    out = pl.pallas_call(
        convnet_kernel,
        out_shape=jax.ShapeDtypeStruct((Bp, H2p), out_store_dtype),
        grid=grid,
        in_specs=in_specs,
        out_specs=out_specs,
        compiler_params=pltpu.CompilerParams(
            dimension_semantics=("parallel",),
            vmem_limit_bytes=vmem_limit),
        cost_estimate=cost,
    )(*args)

    return out[:B, :H2].astype(jnp.float32)


def convnet_ref(x, params):
    """Pure-JAX f32 reference matching the PyTorch forward exactly."""
    w1, b1, w2, b2, fc1_w, fc1_b, fc2_w, fc2_b = params
    h = x[:, None, :]                                                   # (B,1,L)
    h1 = jax.nn.relu(jnp.einsum('oi,bil->bol', w1[:, :, 0], h) + b1[None, :, None])
    h2 = jax.nn.relu(jnp.einsum('oi,bil->bol', w2[:, :, 0], h1) + b2[None, :, None])
    flat = h2.reshape(x.shape[0], -1)                                   # NCW flatten
    f1 = jnp.tanh(flat @ fc1_w.T + fc1_b)
    return f1 @ fc2_w.T + fc2_b


if __name__ == "__main__":
    # Small shapes consistent with the module: batch=2, seq=8.
    # flatten dim = 64 * 8 = 512  =>  hidden_layers = [512, 32, 8]
    B, L = 2, 8
    C1, C2 = 32, 64
    H0, H1, H2 = C2 * L, 32, 8

    key = jax.random.PRNGKey(0)
    ks = jax.random.split(key, 9)

    x = jax.random.normal(ks[0], (B, L), jnp.float32)

    # Deterministic synthetic parameters (PyTorch shapes).
    params = (
        0.1 * jax.random.normal(ks[1], (C1, 1, 1), jnp.float32),   # conv1.weight
        0.1 * jax.random.normal(ks[2], (C1,), jnp.float32),        # conv1.bias
        0.1 * jax.random.normal(ks[3], (C2, C1, 1), jnp.float32),  # conv2.weight
        0.1 * jax.random.normal(ks[4], (C2,), jnp.float32),        # conv2.bias
        0.05 * jax.random.normal(ks[5], (H1, H0), jnp.float32),    # fc1.weight
        0.05 * jax.random.normal(ks[6], (H1,), jnp.float32),       # fc1.bias
        0.05 * jax.random.normal(ks[7], (H2, H1), jnp.float32),    # fc2.weight
        0.05 * jax.random.normal(ks[8], (H2,), jnp.float32),       # fc2.bias
    )

    out = convnet_forward(x, params)
    out = jax.block_until_ready(out)

    ref = convnet_ref(x, params)
    assert out.shape == (B, H2)
    # bf16 matmul operands / elementwise / output store with f32 accumulation
    # -> loosened tolerance vs the f32 reference.
    assert jnp.allclose(out, ref, rtol=2e-2, atol=2e-2), (out, ref)

    print("KERNEL_OK")
</pallas_src>

<mosaic_0001>
module attributes {stable_mosaic.version = 11 : i64} {
  func.func @convnet_kernel(%arg0: i32, %arg1: memref<8x8xf32, #tpu.memory_space<vmem>>, %arg2: memref<8x256xbf16, #tpu.memory_space<vmem>>, %arg3: memref<1x256xbf16, #tpu.memory_space<vmem>>, %arg4: memref<256x512xbf16, #tpu.memory_space<vmem>>, %arg5: memref<1x512xbf16, #tpu.memory_space<vmem>>, %arg6: memref<512x128xbf16, #tpu.memory_space<vmem>>, %arg7: memref<1x128xf32, #tpu.memory_space<vmem>>, %arg8: memref<128x128xbf16, #tpu.memory_space<vmem>>, %arg9: memref<1x128xf32, #tpu.memory_space<vmem>>, %arg10: memref<8x128xbf16, #tpu.memory_space<vmem>>) attributes {dimension_semantics = [#tpu.dimension_semantics<parallel>], iteration_bounds = array<i64: 1>, scalar_prefetch = 0 : i64, scratch_operands = 0 : i64, tpu.core_type = #tpu.core_type<tc>, window_params = [{transform_indices = @transform_0, window_bounds = array<i64: 8, 8>}, {pipeline_mode = #tpu.pipeline_mode<synchronous>, transform_indices = @transform_1, window_bounds = array<i64: 8, 256>}, {pipeline_mode = #tpu.pipeline_mode<synchronous>, transform_indices = @transform_2, window_bounds = array<i64: 1, 256>}, {pipeline_mode = #tpu.pipeline_mode<synchronous>, transform_indices = @transform_3, window_bounds = array<i64: 256, 512>}, {pipeline_mode = #tpu.pipeline_mode<synchronous>, transform_indices = @transform_4, window_bounds = array<i64: 1, 512>}, {pipeline_mode = #tpu.pipeline_mode<synchronous>, transform_indices = @transform_5, window_bounds = array<i64: 512, 128>}, {pipeline_mode = #tpu.pipeline_mode<synchronous>, transform_indices = @transform_6, window_bounds = array<i64: 1, 128>}, {pipeline_mode = #tpu.pipeline_mode<synchronous>, transform_indices = @transform_7, window_bounds = array<i64: 128, 128>}, {pipeline_mode = #tpu.pipeline_mode<synchronous>, transform_indices = @transform_8, window_bounds = array<i64: 1, 128>}, {transform_indices = @transform_9, window_bounds = array<i64: 8, 128>}]} {
    %c0 = arith.constant 0 : index
    %c0_0 = arith.constant 0 : index
    %0 = vector.load %arg1[%c0, %c0_0] : memref<8x8xf32, #tpu.memory_space<vmem>>, vector<8x8xf32>
    %1 = arith.truncf %0 : vector<8x8xf32> to vector<8x8xbf16>
    %c0_1 = arith.constant 0 : index
    %c0_2 = arith.constant 0 : index
    %2 = vector.load %arg2[%c0_1, %c0_2] : memref<8x256xbf16, #tpu.memory_space<vmem>>, vector<8x256xbf16>
    %cst = arith.constant dense<0.000000e+00> : vector<8x256xf32>
    %3 = tpu.matmul %1, %2, %cst {dimension_numbers = #tpu.dot_dimension_numbers<[1], [0], [0], [1], [0, 0, 1, 1], [], []>} : vector<8x8xbf16>, vector<8x256xbf16>, vector<8x256xf32> -> vector<8x256xf32>
    %4 = arith.truncf %3 : vector<8x256xf32> to vector<8x256xbf16>
    %c0_3 = arith.constant 0 : index
    %c0_4 = arith.constant 0 : index
    %5 = vector.load %arg3[%c0_3, %c0_4] : memref<1x256xbf16, #tpu.memory_space<vmem>>, vector<1x256xbf16>
    %6 = vector.broadcast %5 : vector<1x256xbf16> to vector<8x256xbf16>
    %7 = arith.addf %4, %6 : vector<8x256xbf16>
    %cst_5 = arith.constant 0.000000e+00 : bf16
    %8 = vector.broadcast %cst_5 : bf16 to vector<8x256xbf16>
    %9 = arith.maximumf %7, %8 : vector<8x256xbf16>
    %c0_6 = arith.constant 0 : index
    %c0_7 = arith.constant 0 : index
    %10 = vector.load %arg4[%c0_6, %c0_7] : memref<256x512xbf16, #tpu.memory_space<vmem>>, vector<256x512xbf16>
    %cst_8 = arith.constant dense<0.000000e+00> : vector<8x512xf32>
    %11 = tpu.matmul %9, %10, %cst_8 {dimension_numbers = #tpu.dot_dimension_numbers<[1], [0], [0], [1], [0, 0, 1, 1], [], []>} : vector<8x256xbf16>, vector<256x512xbf16>, vector<8x512xf32> -> vector<8x512xf32>
    %12 = arith.truncf %11 : vector<8x512xf32> to vector<8x512xbf16>
    %c0_9 = arith.constant 0 : index
    %c0_10 = arith.constant 0 : index
    %13 = vector.load %arg5[%c0_9, %c0_10] : memref<1x512xbf16, #tpu.memory_space<vmem>>, vector<1x512xbf16>
    %14 = vector.broadcast %13 : vector<1x512xbf16> to vector<8x512xbf16>
    %15 = arith.addf %12, %14 : vector<8x512xbf16>
    %cst_11 = arith.constant 0.000000e+00 : bf16
    %16 = vector.broadcast %cst_11 : bf16 to vector<8x512xbf16>
    %17 = arith.maximumf %15, %16 : vector<8x512xbf16>
    %c0_12 = arith.constant 0 : index
    %c0_13 = arith.constant 0 : index
    %18 = vector.load %arg6[%c0_12, %c0_13] : memref<512x128xbf16, #tpu.memory_space<vmem>>, vector<512x128xbf16>
    %cst_14 = arith.constant dense<0.000000e+00> : vector<8x128xf32>
    %19 = tpu.matmul %17, %18, %cst_14 {dimension_numbers = #tpu.dot_dimension_numbers<[1], [0], [0], [1], [0, 0, 1, 1], [], []>} : vector<8x512xbf16>, vector<512x128xbf16>, vector<8x128xf32> -> vector<8x128xf32>
    %c0_15 = arith.constant 0 : index
    %c0_16 = arith.constant 0 : index
    %20 = vector.load %arg7[%c0_15, %c0_16] : memref<1x128xf32, #tpu.memory_space<vmem>>, vector<1x128xf32>
    %21 = vector.broadcast %20 : vector<1x128xf32> to vector<8x128xf32>
    %22 = arith.addf %19, %21 : vector<8x128xf32>
    %23 = math.tanh %22 : vector<8x128xf32>
    %24 = arith.truncf %23 : vector<8x128xf32> to vector<8x128xbf16>
    %c0_17 = arith.constant 0 : index
    %c0_18 = arith.constant 0 : index
    %25 = vector.load %arg8[%c0_17, %c0_18] : memref<128x128xbf16, #tpu.memory_space<vmem>>, vector<128x128xbf16>
    %cst_19 = arith.constant dense<0.000000e+00> : vector<8x128xf32>
    %26 = tpu.matmul %24, %25, %cst_19 {dimension_numbers = #tpu.dot_dimension_numbers<[1], [0], [0], [1], [0, 0, 1, 1], [], []>} : vector<8x128xbf16>, vector<128x128xbf16>, vector<8x128xf32> -> vector<8x128xf32>
    %c0_20 = arith.constant 0 : index
    %c0_21 = arith.constant 0 : index
    %27 = vector.load %arg9[%c0_20, %c0_21] : memref<1x128xf32, #tpu.memory_space<vmem>>, vector<1x128xf32>
    %28 = vector.broadcast %27 : vector<1x128xf32> to vector<8x128xf32>
    %29 = arith.addf %26, %28 : vector<8x128xf32>
    %30 = arith.truncf %29 : vector<8x128xf32> to vector<8x128xbf16>
    %c0_22 = arith.constant 0 : index
    %c0_23 = arith.constant 0 : index
    %31 = vector.load %arg10[%c0_22, %c0_23] : memref<8x128xbf16, #tpu.memory_space<vmem>>, vector<8x128xbf16>
    tpu.vector_store %arg10[%c0_22, %c0_23], %30 {strides = array<i32>} : memref<8x128xbf16, #tpu.memory_space<vmem>>, vector<8x128xbf16>,
    return
  }
  func.func @transform_0(%arg0: i32) -> (i32, i32) {
    %c0_i32 = arith.constant 0 : i32
    %c0_i32_0 = arith.constant 0 : i32
    return %arg0, %c0_i32 : i32, i32
  }
  func.func @transform_1(%arg0: i32) -> (i32, i32) {
    %c0_i32 = arith.constant 0 : i32
    %c0_i32_0 = arith.constant 0 : i32
    %c0_i32_1 = arith.constant 0 : i32
    return %c0_i32, %c0_i32_0 : i32, i32
  }
  func.func @transform_2(%arg0: i32) -> (i32, i32) {
    %c0_i32 = arith.constant 0 : i32
    %c0_i32_0 = arith.constant 0 : i32
    %c0_i32_1 = arith.constant 0 : i32
    return %c0_i32, %c0_i32_0 : i32, i32
  }
  func.func @transform_3(%arg0: i32) -> (i32, i32) {
    %c0_i32 = arith.constant 0 : i32
    %c0_i32_0 = arith.constant 0 : i32
    %c0_i32_1 = arith.constant 0 : i32
    return %c0_i32, %c0_i32_0 : i32, i32
  }
  func.func @transform_4(%arg0: i32) -> (i32, i32) {
    %c0_i32 = arith.constant 0 : i32
    %c0_i32_0 = arith.constant 0 : i32
    %c0_i32_1 = arith.constant 0 : i32
    return %c0_i32, %c0_i32_0 : i32, i32
  }
  func.func @transform_5(%arg0: i32) -> (i32, i32) {
    %c0_i32 = arith.constant 0 : i32
    %c0_i32_0 = arith.constant 0 : i32
    %c0_i32_1 = arith.constant 0 : i32
    return %c0_i32, %c0_i32_0 : i32, i32
  }
  func.func @transform_6(%arg0: i32) -> (i32, i32) {
    %c0_i32 = arith.constant 0 : i32
    %c0_i32_0 = arith.constant 0 : i32
    %c0_i32_1 = arith.constant 0 : i32
    return %c0_i32, %c0_i32_0 : i32, i32
  }
  func.func @transform_7(%arg0: i32) -> (i32, i32) {
    %c0_i32 = arith.constant 0 : i32
    %c0_i32_0 = arith.constant 0 : i32
    %c0_i32_1 = arith.constant 0 : i32
    return %c0_i32, %c0_i32_0 : i32, i32
  }
  func.func @transform_8(%arg0: i32) -> (i32, i32) {
    %c0_i32 = arith.constant 0 : i32
    %c0_i32_0 = arith.constant 0 : i32
    %c0_i32_1 = arith.constant 0 : i32
    return %c0_i32, %c0_i32_0 : i32, i32
  }
  func.func @transform_9(%arg0: i32) -> (i32, i32) {
    %c0_i32 = arith.constant 0 : i32
    %c0_i32_0 = arith.constant 0 : i32
    return %arg0, %c0_i32 : i32, i32
  }
}

</mosaic_0001>

<bundles_post_ra>
// kernel: tpu_custom_call.1
= control target key start
LH: loop header
LB: loop body
LE: loop exit
PB: predicated region body
PF: predicated region fallthrough
CT: control target
= control target key end

     0   :  { %14 = vsyncpa [#allocation3], 0  ;;  %s2001_s0 = inlined_call_operand.hbm [shape: f32[8,8], index: 0, kind: input, shape index: {}]   ;;  %s2002_s1 = inlined_call_operand.hbm [shape: bf16[8,256], index: 1, kind: input, shape index: {}]   ;;  %s2003_s2 = inlined_call_operand.hbm [shape: bf16[1,256], index: 2, kind: input, shape index: {}]   ;;  %s2004_s3 = inlined_call_operand.hbm [shape: bf16[256,512], index: 3, kind: input, shape index: {}]   ;;  %s2005_s4 = inlined_call_operand.hbm [shape: bf16[1,512], index: 4, kind: input, shape index: {}]   ;;  %s2006_s5 = inlined_call_operand.hbm [shape: bf16[512,128], index: 5, kind: input, shape index: {}]   ;;  %s2007_s6 = inlined_call_operand.vmem [shape: f32[1,128], index: 6, kind: input, shape index: {}]   ;;  %s2008_s7 = inlined_call_operand.hbm [shape: bf16[128,128], index: 7, kind: input, shape index: {}]   ;;  %s2009_s8 = inlined_call_operand.vmem [shape: f32[1,128], index: 8, kind: input, shape index: {}]   ;;  %s2010_s9 = inlined_call_operand.hbm [shape: bf16[8,128], index: 9, kind: output, shape index: {}]  }
   0x1   :  { %15 = vsyncpa [#allocation6], 0 }
   0x2   :  { %16 = vsyncpa [#allocation9], 0 }
   0x3   :  { %17 = vsyncpa [#allocation12], 0  ;;  %s35_s11 = sshll.u32 %s2002_s1, 4  ;;  %s36_s11 = int_to_ptr.hbm [resolvable:$true] %s35_s11 }
   0x4   :  { %18 = vsyncpa [#allocation4], 0  ;;  %s1897_s12 = smov [#allocation5]   ;;  %s56_s16 = sshll.u32 %s2004_s3, 4  ;;  %s57_s16 = int_to_ptr.hbm [resolvable:$true] %s56_s16 }
   0x5   :  { %s37_s13 = sshll.u32 %s1897_s12, 4  ;;  %s1898_s17 = smov [#allocation8]   ;;  %s38_s13 = int_to_ptr.vmem [resolvable:$true] %s37_s13 }
   0x6   :  { %40 = dma.hbm_to_vmem [thread:$0]  %s36_s11, 128, %s38_s13, [#allocation6]  }
   0x7   :  { %s58_s18 = sshll.u32 %s1898_s17, 4  ;;  %s1899_s19 = smov 256   ;;  %s59_s18 = int_to_ptr.vmem [resolvable:$true] %s58_s18 }
   0x8   :  { %s1900_s20 = smov 16   ;;  %s80_s1 = sshll.u32 %s2006_s5, 4  ;;  %s81_s1 = int_to_ptr.hbm [resolvable:$true] %s80_s1 }
   0x9   :  { %64 = dma.hbm_to_vmem [thread:$0]  %s57_s16, 8192, %s59_s18, [#allocation9], %s1899_s19, %s1899_s19, %s1900_s20  }
   0xa   :  { %s1901_s23 = smov [#allocation11]   ;;  %s24_s3 = sshll.u32 %s2001_s0, 4  ;;  %s25_s3 = int_to_ptr.hbm [resolvable:$true] %s24_s3 }
   0xb   :  { %s82_s24 = sshll.u32 %s1901_s23, 4  ;;  %s1902_s27 = smov 64   ;;  %s83_s24 = int_to_ptr.vmem [resolvable:$true] %s82_s24 }
   0xc   :  { %s1903_s28 = smov 4   ;;  %s1904_s29 = smov [#allocation2]  }
   0xd   :  { %88 = dma.hbm_to_vmem [thread:$0]  %s81_s1, 4096, %s83_s24, [#allocation12], %s1902_s27, %s1902_s27, %s1903_s28  }
   0xe   :  { %s26_s30 = sshll.u32 %s1904_s29, 4  ;;  %s46_s12 = sshll.u32 %s2003_s2, 4  ;;  %s27_s30 = int_to_ptr.vmem [resolvable:$true] %s26_s30  ;;  %s47_s12 = int_to_ptr.hbm [resolvable:$true] %s46_s12 }
   0xf   :  { %29 = dma.hbm_to_vmem [thread:$0]  %s25_s3, 128, %s27_s30, [#allocation3]  }
  0x10   :  { %s70_s14 = sshll.u32 %s2005_s4, 4  ;;  %s1905_s15 = smov [#allocation7]   ;;  %s71_s14 = int_to_ptr.hbm [resolvable:$true] %s70_s14 }
  0x11   :  { %s48_s16 = sshll.u32 %s1905_s15, 4  ;;  %s1906_s0 = smov [#allocation10]   ;;  %s49_s16 = int_to_ptr.vmem [resolvable:$true] %s48_s16 }
  0x12   :  { %51 = dma.hbm_to_vmem [thread:$0]  %s47_s12, 32, %s49_s16, [#allocation6]  }
  0x13   :  { %s72_s17 = sshll.u32 %s1906_s0, 4  ;;  %s95_s20 = sshll.u32 %s2008_s7, 4  ;;  %s73_s17 = int_to_ptr.vmem [resolvable:$true] %s72_s17  ;;  %s96_s20 = int_to_ptr.hbm [resolvable:$true] %s95_s20 }
  0x14   :  { %75 = dma.hbm_to_vmem [thread:$0]  %s71_s14, 64, %s73_s17, [#allocation9]  }
  0x15   :  { %s1907_s2 = smov [#allocation13]  }
  0x16   :  { %s97_s21 = sshll.u32 %s1907_s2, 4  ;;  %s98_s21 = int_to_ptr.vmem [resolvable:$true] %s97_s21 }
  0x17   :  { %103 = dma.hbm_to_vmem [thread:$0]  %s96_s20, 1024, %s98_s21, [#allocation12], %s1902_s27, %s1902_s27, %s1903_s28  }
  0x18   :  { %1887 = dma.done.wait [#allocation3], 128  }
  0x19   :  { %1888 = vsyncadd [#allocation3], 4294967168 }
  0x1a   :  { %1889 = dma.done.wait [#allocation6], 160  }
  0x1b   :  { %1890 = vsyncadd [#allocation6], 4294967136 }
  0x1c   :  { %1891 = dma.done.wait [#allocation9], 8256  }
  0x1d   :  { %1892 = vsyncadd [#allocation9], 4294959040 }
  0x1e   :  { %1893 = dma.done.wait [#allocation12], 5120  }
  0x1f   :  { %1894 = vsyncadd [#allocation12], 4294962176  ;;  %v137_v0 = vld [vmem:[#allocation5] sm:$0xff]  ;;  %vm147_vm0 = vcmask 1043456   ;;  %v135_v1 = vld [vmem:[#allocation2] sm:$0xff]  ;;  %vm143_vm1 = vcmask 64512  }
  0x20   :  { %v1273_v2 = vld [vmem:[#allocation8 + $0xe0] sm:$0xf]  ;;  %v139_v3 = vunpack.c.l.b16 %v137_v0  ;;  %v140_v4 = vunpack.c.h.b16 %v137_v0  ;;  %v1605_v5 = vld [vmem:[#allocation8 + $0xec] sm:$0xf0]  ;;  %v1603_v10 = vld [vmem:[#allocation8 + $0xe4] sm:$0xf]  ;;  %v136_v26 = vpack.c.bf16 %v135_v1, %v135_v1 }
  0x21   :  { %v1401_v6 = vld [vmem:[#allocation8 + $0x1e0] sm:$0xf]  ;;  %v1637_v7 = vld [vmem:[#allocation8 + $0x1ec] sm:$0xf0]  ;;  %v1274_v8 = vor.u32 %v1605_v5, %v1273_v2  ;;  %v1275_v11 = vld [vmem:[#allocation8 + $0xf0] sm:$0xf0] }
  0x22   :  { %v1402_v9 = vor.u32 %v1637_v7, %v1401_v6  ;;  %v1635_v12 = vld [vmem:[#allocation8 + $0x1e4] sm:$0xf]  ;;  %v141_v13 = vpack.c.b16 %v139_v3, %v139_v3  ;;  %v142_v14 = vpack.c.b16 %v140_v4, %v140_v4  ;;  %v1278_v15 = vor.u32 %v1603_v10, %v1275_v11  ;;  %v1403_v16 = vld [vmem:[#allocation8 + $0x1f0] sm:$0xf0]  ;;  %v1257_v17 = vld [vmem:[#allocation8 + $0xc0] sm:$0xf] }
  0x23   :  { %v1601_v18 = vld [vmem:[#allocation8 + $0xcc] sm:$0xf0]  ;;  %589 = vmatpush.bf16.msra.mxu2 %v1274_v8  ;;  %v1406_v19 = vor.u32 %v1635_v12, %v1403_v16  ;;  %v1385_v21 = vld [vmem:[#allocation8 + $0x1c0] sm:$0xf]  ;;  %v1599_v23 = vld [vmem:[#allocation8 + $0xc4] sm:$0xf] }
  0x24   :  { %602 = vmatpush.bf16.msra.mxu3 %v1402_v9  ;;  %v1258_v20 = vor.u32 %v1601_v18, %v1257_v17  ;;  %v1633_v22 = vld [vmem:[#allocation8 + $0x1cc] sm:$0xf0]  ;;  %v149_v24 = vsel %vm147_vm0, %v141_v13, 0  ;;  %v152_v25 = vsel %vm147_vm0, %v142_v14, 0  ;;  %v1259_v28 = vld [vmem:[#allocation8 + $0xd0] sm:$0xf0] }
  0x25   :  { %v1386_v27 = vor.u32 %v1633_v22, %v1385_v21  ;;  %v1631_v29 = vld [vmem:[#allocation8 + $0x1c4] sm:$0xf]  ;;  %161 = vmatpush.bf16.msra.mxu0 %v149_v24  ;;  %174 = vmatpush.bf16.msra.mxu1 %v152_v25  ;;  %v1387_v30 = vld [vmem:[#allocation8 + $0x1d0] sm:$0xf0]  ;;  %v1241_v31 = vld [vmem:[#allocation8 + $0xa0] sm:$0xf]  ;;  %v1262_v33 = vor.u32 %v1599_v23, %v1259_v28 }
  0x26   :  { %v1597_v32 = vld [vmem:[#allocation8 + $0xac] sm:$0xf0]  ;;  %v1390_v34 = vor.u32 %v1631_v29, %v1387_v30  ;;  %v1369_v35 = vld [vmem:[#allocation8 + $0x1a0] sm:$0xf]  ;;  %v1595_v37 = vld [vmem:[#allocation8 + $0xa4] sm:$0xf] }
  0x27   :  { %v1629_v36 = vld [vmem:[#allocation8 + $0x1ac] sm:$0xf0]  ;;  %590 = vmatpush.bf16.msra.mxu2 %v1258_v20  ;;  %v1242_v38 = vor.u32 %v1597_v32, %v1241_v31  ;;  %v1243_v40 = vld [vmem:[#allocation8 + $0xb0] sm:$0xf0]  ;;  %v1627_v41 = vld [vmem:[#allocation8 + $0x1a4] sm:$0xf] }
  0x28   :  { %603 = vmatpush.bf16.msra.mxu3 %v1386_v27  ;;  %v1370_v39 = vor.u32 %v1629_v36, %v1369_v35  ;;  %v1371_v42 = vld [vmem:[#allocation8 + $0x1b0] sm:$0xf0]  ;;  %1157 = vmatmul.msk.bf16.vlgmr.msra.gmra.mxu0 %vm143_vm1, %v136_v26  ;;  %v1225_v43 = vld [vmem:[#allocation8 + $0x80] sm:$0xf]  ;;  %v1593_v44 = vld [vmem:[#allocation8 + $0x8c] sm:$0xf0]  ;;  %v1246_v47 = vor.u32 %v1595_v37, %v1243_v40 }
  0x29   :  { %615 = vmatpush.bf16.msrb.mxu0 %v1278_v15  ;;  %628 = vmatpush.bf16.msrb.mxu1 %v1406_v19  ;;  %v1353_v45 = vld [vmem:[#allocation8 + $0x180] sm:$0xf]  ;;  %v1625_v46 = vld [vmem:[#allocation8 + $0x18c] sm:$0xf0]  ;;  %v1374_v48 = vor.u32 %v1627_v41, %v1371_v42  ;;  %v1591_v49 = vld [vmem:[#allocation8 + $0x84] sm:$0xf]  ;;  %v1226_v51 = vor.u32 %v1593_v44, %v1225_v43 }
  0x2a   :  { %1158 = vmatmul.msk.bf16.vlgmr.msra.gmra.mxu1 %vm143_vm1, %v136_v26  ;;  %v1227_v50 = vld [vmem:[#allocation8 + $0x90] sm:$0xf0]  ;;  %v1354_v52 = vor.u32 %v1625_v46, %v1353_v45  ;;  %v1623_v53 = vld [vmem:[#allocation8 + $0x184] sm:$0xf]  ;;  %v1209_v55 = vld [vmem:[#allocation8 + $0x60] sm:$0xf] }
  0x2b   :  { %591 = vmatpush.bf16.msra.mxu2 %v1242_v38  ;;  %v1355_v54 = vld [vmem:[#allocation8 + $0x190] sm:$0xf0]  ;;  %v1589_v56 = vld [vmem:[#allocation8 + $0x6c] sm:$0xf0]  ;;  %v1337_v57 = vld [vmem:[#allocation8 + $0x160] sm:$0xf]  ;;  %v1230_v59 = vor.u32 %v1591_v49, %v1227_v50 }
  0x2c   :  { %604 = vmatpush.bf16.msra.mxu3 %v1370_v39  ;;  %v1621_v58 = vld [vmem:[#allocation8 + $0x16c] sm:$0xf0]  ;;  %v1358_v60 = vor.u32 %v1623_v53, %v1355_v54  ;;  %v1587_v61 = vld [vmem:[#allocation8 + $0x64] sm:$0xf]  ;;  %v1211_v62 = vld [vmem:[#allocation8 + $0x70] sm:$0xf0]  ;;  %v1210_v63 = vor.u32 %v1589_v56, %v1209_v55 }
  0x2d   :  { %616 = vmatpush.bf16.msrb.mxu0 %v1262_v33  ;;  %629 = vmatpush.bf16.msrb.mxu1 %v1390_v34  ;;  %v1338_v0 = vor.u32 %v1621_v58, %v1337_v57  ;;  %v1619_v1 = vld [vmem:[#allocation8 + $0x164] sm:$0xf]  ;;  %v1339_v2 = vld [vmem:[#allocation8 + $0x170] sm:$0xf0]  ;;  %v1193_v3 = vld [vmem:[#allocation8 + $0x40] sm:$0xf]  ;;  %v1214_v7 = vor.u32 %v1587_v61, %v1211_v62 }
  0x2e   :  { %v1585_v4 = vld [vmem:[#allocation8 + $0x4c] sm:$0xf0]  ;;  %v1321_v5 = vld [vmem:[#allocation8 + $0x140] sm:$0xf]  ;;  %v1342_v8 = vor.u32 %v1619_v1, %v1339_v2  ;;  %v1583_v9 = vld [vmem:[#allocation8 + $0x44] sm:$0xf] }
  0x2f   :  { %592 = vmatpush.bf16.msra.mxu2 %v1226_v51  ;;  %v1617_v6 = vld [vmem:[#allocation8 + $0x14c] sm:$0xf0]  ;;  %v1195_v10 = vld [vmem:[#allocation8 + $0x50] sm:$0xf0]  ;;  %v1194_v11 = vor.u32 %v1585_v4, %v1193_v3  ;;  %v1615_v13 = vld [vmem:[#allocation8 + $0x144] sm:$0xf] }
  0x30   :  { %605 = vmatpush.bf16.msra.mxu3 %v1354_v52  ;;  %v1322_v12 = vor.u32 %v1617_v6, %v1321_v5  ;;  %v1323_v14 = vld [vmem:[#allocation8 + $0x150] sm:$0xf0]  ;;  %v1177_v15 = vld [vmem:[#allocation8 + $0x20] sm:$0xf]  ;;  %v1581_v16 = vld [vmem:[#allocation8 + $0x2c] sm:$0xf0]  ;;  %v1198_v21 = vor.u32 %v1583_v9, %v1195_v10 }
  0x31   :  { %617 = vmatpush.bf16.msrb.mxu0 %v1246_v47  ;;  %630 = vmatpush.bf16.msrb.mxu1 %v1374_v48  ;;  %v1305_v17 = vld [vmem:[#allocation8 + $0x120] sm:$0xf]  ;;  %v1613_v18 = vld [vmem:[#allocation8 + $0x12c] sm:$0xf0]  ;;  %v1579_v19 = vld [vmem:[#allocation8 + $0x24] sm:$0xf]  ;;  %v1326_v22 = vor.u32 %v1615_v13, %v1323_v14  ;;  %v1178_v26 = vor.u32 %v1581_v16, %v1177_v15 }
  0x32   :  { %v1179_v20 = vld [vmem:[#allocation8 + $0x30] sm:$0xf0]  ;;  %v1611_v23 = vld [vmem:[#allocation8 + $0x124] sm:$0xf]  ;;  %v1161_v25 = vld [vmem:[#allocation8] sm:$0xf]  ;;  %v1306_v27 = vor.u32 %v1613_v18, %v1305_v17 }
  0x33   :  { %593 = vmatpush.bf16.msra.mxu2 %v1210_v63  ;;  %v1307_v24 = vld [vmem:[#allocation8 + $0x130] sm:$0xf0]  ;;  %v1577_v28 = vld [vmem:[#allocation8 + $0xc] sm:$0xf0]  ;;  %v1289_v29 = vld [vmem:[#allocation8 + $0x100] sm:$0xf]  ;;  %v1182_v35 = vor.u32 %v1579_v19, %v1179_v20 }
  0x34   :  { %606 = vmatpush.bf16.msra.mxu3 %v1338_v0  ;;  %v1609_v30 = vld [vmem:[#allocation8 + $0x10c] sm:$0xf0]  ;;  %v1281_v31 = vld [vmem:[#allocation8 + $0xe8] sm:$0xf]  ;;  %v1606_v32 = vld [vmem:[#allocation8 + $0xf4] sm:$0xf0]  ;;  %v1310_v36 = vor.u32 %v1611_v23, %v1307_v24  ;;  %v1162_v39 = vor.u32 %v1577_v28, %v1161_v25 }
  0x35   :  { %618 = vmatpush.bf16.msrb.mxu0 %v1230_v59  ;;  %631 = vmatpush.bf16.msrb.mxu1 %v1358_v60  ;;  %v1409_v33 = vld [vmem:[#allocation8 + $0x1e8] sm:$0xf]  ;;  %v1638_v34 = vld [vmem:[#allocation8 + $0x1f4] sm:$0xf0]  ;;  %v1575_v37 = vld [vmem:[#allocation8 + $0x4] sm:$0xf]  ;;  %v1290_v40 = vor.u32 %v1609_v30, %v1289_v29  ;;  %v1282_v44 = vor.u32 %v1606_v32, %v1281_v31 }
  0x36   :  { %v1163_v38 = vld [vmem:[#allocation8 + $0x10] sm:$0xf0]  ;;  %v1607_v41 = vld [vmem:[#allocation8 + $0x104] sm:$0xf]  ;;  %v1604_v43 = vld [vmem:[#allocation8 + $0xec] sm:$0xf]  ;;  %v1410_v45 = vor.u32 %v1638_v34, %v1409_v33 }
  0x37   :  { %594 = vmatpush.bf16.msra.mxu2 %v1194_v11  ;;  %v1291_v42 = vld [vmem:[#allocation8 + $0x110] sm:$0xf0]  ;;  %v1283_v46 = vld [vmem:[#allocation8 + $0xf8] sm:$0xf0]  ;;  %v1636_v47 = vld [vmem:[#allocation8 + $0x1ec] sm:$0xf]  ;;  %v1166_v49 = vor.u32 %v1575_v37, %v1163_v38 }
  0x38   :  { %607 = vmatpush.bf16.msra.mxu3 %v1322_v12  ;;  %v1411_v48 = vld [vmem:[#allocation8 + $0x1f8] sm:$0xf0]  ;;  %v1294_v50 = vor.u32 %v1607_v41, %v1291_v42  ;;  %v1286_v51 = vor.u32 %v1604_v43, %v1283_v46  ;;  %v1265_v54 = vld [vmem:[#allocation8 + $0xc8] sm:$0xf]  ;;  %v1602_v55 = vld [vmem:[#allocation8 + $0xd4] sm:$0xf0] }
  0x39   :  { %619 = vmatpush.bf16.msrb.mxu0 %v1214_v7  ;;  %632 = vmatpush.bf16.msrb.mxu1 %v1342_v8  ;;  %v1414_v52 = vor.u32 %v1636_v47, %v1411_v48  ;;  %v181_v53 = vld [vmem:[#allocation7] sm:$0x3]  ;;  %v1393_v56 = vld [vmem:[#allocation8 + $0x1c8] sm:$0xf]  ;;  %v1266_v57 = vor.u32 %v1602_v55, %v1265_v54  ;;  %v1634_v58 = vld [vmem:[#allocation8 + $0x1d4] sm:$0xf0] }
  0x3a   :  { %183 = vst [vmem:[#allocation1] ss:$9 sm:$0xff] %v181_v53  ;;  %v1394_v59 = vor.u32 %v1634_v58, %v1393_v56  ;;  %v1600_v60 = vld [vmem:[#allocation8 + $0xcc] sm:$0xf]  ;;  %v1267_v61 = vld [vmem:[#allocation8 + $0xd8] sm:$0xf0] }
  0x3b   :  { %595 = vmatpush.bf16.msra.mxu2 %v1178_v26  ;;  %v1632_v62 = vld [vmem:[#allocation8 + $0x1cc] sm:$0xf]  ;;  %v1270_v63 = vor.u32 %v1600_v60, %v1267_v61  ;;  %v1395_v0 = vld [vmem:[#allocation8 + $0x1d8] sm:$0xf0]  ;;  %v1249_v2 = vld [vmem:[#allocation8 + $0xa8] sm:$0xf] }
  0x3c   :  { %608 = vmatpush.bf16.msra.mxu3 %v1306_v27  ;;  %v1398_v1 = vor.u32 %v1632_v62, %v1395_v0  ;;  %v1598_v3 = vld [vmem:[#allocation8 + $0xb4] sm:$0xf0]  ;;  %v1377_v5 = vld [vmem:[#allocation8 + $0x1a8] sm:$0xf]  ;;  %v1596_v7 = vld [vmem:[#allocation8 + $0xac] sm:$0xf] }
  0x3d   :  { %620 = vmatpush.bf16.msrb.mxu0 %v1198_v21  ;;  %633 = vmatpush.bf16.msrb.mxu1 %v1326_v22  ;;  %v1250_v4 = vor.u32 %v1598_v3, %v1249_v2  ;;  %v1630_v6 = vld [vmem:[#allocation8 + $0x1b4] sm:$0xf0]  ;;  %v1251_v9 = vld [vmem:[#allocation8 + $0xb8] sm:$0xf0]  ;;  %v1628_v10 = vld [vmem:[#allocation8 + $0x1ac] sm:$0xf] }
  0x3e   :  { %v1378_v8 = vor.u32 %v1630_v6, %v1377_v5  ;;  %v1379_v11 = vld [vmem:[#allocation8 + $0x1b8] sm:$0xf0]  ;;  %v1254_v12 = vor.u32 %v1596_v7, %v1251_v9  ;;  %v1233_v14 = vld [vmem:[#allocation8 + $0x88] sm:$0xf]  ;;  %v1594_v15 = vld [vmem:[#allocation8 + $0x94] sm:$0xf0] }
  0x3f   :  { %596 = vmatpush.bf16.msra.mxu2 %v1162_v39  ;;  %v1382_v13 = vor.u32 %v1628_v10, %v1379_v11  ;;  %v1361_v16 = vld [vmem:[#allocation8 + $0x188] sm:$0xf]  ;;  %v1234_v17 = vor.u32 %v1594_v15, %v1233_v14  ;;  %v1626_v18 = vld [vmem:[#allocation8 + $0x194] sm:$0xf0]  ;;  %v1592_v19 = vld [vmem:[#allocation8 + $0x8c] sm:$0xf] }
  0x40   :  { %609 = vmatpush.bf16.msra.mxu3 %v1290_v40  ;;  %v1235_v20 = vld [vmem:[#allocation8 + $0x98] sm:$0xf0]  ;;  %v1362_v21 = vor.u32 %v1626_v18, %v1361_v16  ;;  %v1624_v23 = vld [vmem:[#allocation8 + $0x18c] sm:$0xf]  ;;  %v695_v28 = vld [vmem:[#allocation10] sm:$0xf] }
  0x41   :  { %621 = vmatpush.bf16.msrb.mxu0 %v1182_v35  ;;  %634 = vmatpush.bf16.msrb.mxu1 %v1310_v36  ;;  %v1238_v22 = vor.u32 %v1592_v19, %v1235_v20  ;;  %v1363_v24 = vld [vmem:[#allocation8 + $0x198] sm:$0xf0]  ;;  %v1984_v26 = vld [vmem:[#allocation1] sm:$0xff]  ;;  %v1986_v27 = vld [vmem:[#allocation1 + $0x9] sm:$0xff]  ;;  %s1144_s26 = sshll.u32 %s2010_s9, 4  ;;  %s1145_s26 = int_to_ptr.hbm [resolvable:$true] %s1144_s26 }
  0x42   :  { %v1366_v25 = vor.u32 %v1624_v23, %v1363_v24  ;;  %697 = vst [vmem:[#allocation1] ss:$9 sm:$0xff] %v695_v28  ;;  %v1217_v29 = vld [vmem:[#allocation8 + $0x68] sm:$0xf]  ;;  %v1590_v30 = vld [vmem:[#allocation8 + $0x74] sm:$0xf0]  ;;  %v189_v14 = vpack.i.b16 %v1986_v27, %v1986_v27 }
  0x43   :  { %641 = vmatpush.bf16.msrb.mxu2 %v1282_v44  ;;  %v1218_v31 = vor.u32 %v1590_v30, %v1217_v29  ;;  %v1345_v32 = vld [vmem:[#allocation8 + $0x168] sm:$0xf]  ;;  %v1622_v33 = vld [vmem:[#allocation8 + $0x174] sm:$0xf0]  ;;  %v1588_v34 = vld [vmem:[#allocation8 + $0x6c] sm:$0xf] }
  0x44   :  { %654 = vmatpush.bf16.msrb.mxu3 %v1410_v45  ;;  %v1346_v35 = vor.u32 %v1622_v33, %v1345_v32  ;;  %v1219_v36 = vld [vmem:[#allocation8 + $0x78] sm:$0xf0]  ;;  %v1620_v37 = vld [vmem:[#allocation8 + $0x16c] sm:$0xf]  ;;  %v1201_v41 = vld [vmem:[#allocation8 + $0x48] sm:$0xf] }
  0x45   :  { %622 = vmatpush.bf16.msrb.mxu0 %v1166_v49  ;;  %635 = vmatpush.bf16.msrb.mxu1 %v1294_v50  ;;  %v1347_v38 = vld [vmem:[#allocation8 + $0x178] sm:$0xf0]  ;;  %v1222_v39 = vor.u32 %v1588_v34, %v1219_v36  ;;  %v1586_v42 = vld [vmem:[#allocation8 + $0x54] sm:$0xf0]  ;;  %v1329_v43 = vld [vmem:[#allocation8 + $0x148] sm:$0xf] }
  0x46   :  { %v1350_v40 = vor.u32 %v1620_v37, %v1347_v38  ;;  %v1202_v44 = vor.u32 %v1586_v42, %v1201_v41  ;;  %v1618_v45 = vld [vmem:[#allocation8 + $0x154] sm:$0xf0]  ;;  %v1584_v46 = vld [vmem:[#allocation8 + $0x4c] sm:$0xf]  ;;  %v1203_v47 = vld [vmem:[#allocation8 + $0x58] sm:$0xf0] }
  0x47   :  { %642 = vmatpush.bf16.msrb.mxu2 %v1266_v57  ;;  %v1330_v48 = vor.u32 %v1618_v45, %v1329_v43  ;;  %v1206_v49 = vor.u32 %v1584_v46, %v1203_v47  ;;  %v1616_v50 = vld [vmem:[#allocation8 + $0x14c] sm:$0xf]  ;;  %v1582_v54 = vld [vmem:[#allocation8 + $0x34] sm:$0xf0]  ;;  %v1313_v55 = vld [vmem:[#allocation8 + $0x128] sm:$0xf] }
  0x48   :  { %655 = vmatpush.bf16.msrb.mxu3 %v1394_v59  ;;  %v1614_v56 = vld [vmem:[#allocation8 + $0x134] sm:$0xf0]  ;;  %v1580_v58 = vld [vmem:[#allocation8 + $0x2c] sm:$0xf]  ;;  %v1187_v59 = vld [vmem:[#allocation8 + $0x38] sm:$0xf0] }
  0x49   :  { %667 = vmatpush.bf16.msra.mxu0 %v1286_v51  ;;  %680 = vmatpush.bf16.msra.mxu1 %v1414_v52  ;;  %v1331_v51 = vld [vmem:[#allocation8 + $0x158] sm:$0xf0]  ;;  %v1185_v52 = vld [vmem:[#allocation8 + $0x28] sm:$0xf]  ;;  %v1612_v60 = vld [vmem:[#allocation8 + $0x12c] sm:$0xf]  ;;  %v1314_v61 = vor.u32 %v1614_v56, %v1313_v55 }
  0x4a   :  { %v1334_v53 = vor.u32 %v1616_v50, %v1331_v51  ;;  %v1186_v57 = vor.u32 %v1582_v54, %v1185_v52  ;;  %v1315_v62 = vld [vmem:[#allocation8 + $0x138] sm:$0xf0]  ;;  %v1578_v0 = vld [vmem:[#allocation8 + $0x14] sm:$0xf0]  ;;  %v1297_v3 = vld [vmem:[#allocation8 + $0x108] sm:$0xf] }
  0x4b   :  { %643 = vmatpush.bf16.msrb.mxu2 %v1250_v4  ;;  %v1318_v2 = vor.u32 %v1612_v60, %v1315_v62  ;;  %v1610_v4 = vld [vmem:[#allocation8 + $0x114] sm:$0xf0]  ;;  %v1576_v5 = vld [vmem:[#allocation8 + $0xc] sm:$0xf]  ;;  %v1171_v6 = vld [vmem:[#allocation8 + $0x18] sm:$0xf0] }
  0x4c   :  { %656 = vmatpush.bf16.msrb.mxu3 %v1378_v8  ;;  %v1608_v7 = vld [vmem:[#allocation8 + $0x10c] sm:$0xf]  ;;  %v1299_v8 = vld [vmem:[#allocation8 + $0x118] sm:$0xf0]  ;;  %v1298_v10 = vor.u32 %v1610_v4, %v1297_v3  ;;  %v1174_v11 = vor.u32 %v1576_v5, %v1171_v6  ;;  %v191_v16 = vperm.slane %v189_v14, 0  ;;  %v1645_v34 = vld [vmem:[#allocation11 + $0x30] sm:$0xff] }
  0x4d   :  { %668 = vmatpush.bf16.msra.mxu0 %v1270_v63  ;;  %681 = vmatpush.bf16.msra.mxu1 %v1398_v1  ;;  %v1169_v63 = vld [vmem:[#allocation8 + $0x8] sm:$0xf]  ;;  %v1190_v1 = vor.u32 %v1580_v58, %v1187_v59  ;;  %v1646_v32 = vld [vmem:[#allocation11 + $0x38] sm:$0xff]  ;;  %v1644_v36 = vld [vmem:[#allocation11 + $0x28] sm:$0xff] }
  0x4e   :  { %v1170_v9 = vor.u32 %v1578_v0, %v1169_v63  ;;  %v1654_v33 = vld [vmem:[#allocation11 + $0x78] sm:$0xff]  ;;  %v1652_v37 = vld [vmem:[#allocation11 + $0x68] sm:$0xff]  ;;  %v1643_v38 = vld [vmem:[#allocation11 + $0x20] sm:$0xff] }
  0x4f   :  { %644 = vmatpush.bf16.msrb.mxu2 %v1234_v17  ;;  %v1650_v41 = vld [vmem:[#allocation11 + $0x58] sm:$0xff]  ;;  %v1649_v45 = vld [vmem:[#allocation11 + $0x50] sm:$0xff]  ;;  %v1660_v50 = vld [vmem:[#allocation11 + $0xa8] sm:$0xff] }
  0x50   :  { %657 = vmatpush.bf16.msrb.mxu3 %v1362_v21  ;;  %v195_v21 = vunpack.c.l.bf16 %v191_v16  ;;  %v1662_v42 = vld [vmem:[#allocation11 + $0xb8] sm:$0xff]  ;;  %v1661_v46 = vld [vmem:[#allocation11 + $0xb0] sm:$0xff]  ;;  %v1668_v51 = vld [vmem:[#allocation11 + $0xe8] sm:$0xff] }
  0x51   :  { %669 = vmatpush.bf16.msra.mxu0 %v1254_v12  ;;  %682 = vmatpush.bf16.msra.mxu1 %v1382_v13  ;;  %v1302_v12 = vor.u32 %v1608_v7, %v1299_v8  ;;  %v186_v13 = vpack.i.b16 %v1984_v26, %v1984_v26  ;;  %v1670_v43 = vld [vmem:[#allocation11 + $0xf8] sm:$0xff]  ;;  %v1669_v47 = vld [vmem:[#allocation11 + $0xf0] sm:$0xff]  ;;  %v1639_v52 = vld [vmem:[#allocation11] sm:$0xff] }
  0x52   :  { %v1659_v54 = vld [vmem:[#allocation11 + $0xa0] sm:$0xff]  ;;  %v1658_v56 = vld [vmem:[#allocation11 + $0x98] sm:$0xff]  ;;  %v1657_v58 = vld [vmem:[#allocation11 + $0x90] sm:$0xff] }
  0x53   :  { %645 = vmatpush.bf16.msrb.mxu2 %v1218_v31  ;;  %v188_v15 = vperm.slane %v186_v13, 0  ;;  %v1667_v55 = vld [vmem:[#allocation11 + $0xe0] sm:$0xff]  ;;  %v1665_v59 = vld [vmem:[#allocation11 + $0xd0] sm:$0xff]  ;;  %v1656_v60 = vld [vmem:[#allocation11 + $0x88] sm:$0xff] }
  0x54   :  { %658 = vmatpush.bf16.msrb.mxu3 %v1346_v35  ;;  %v1653_v35 = vld [vmem:[#allocation11 + $0x70] sm:$0xff]  ;;  %v698_v62 = vld [vmem:[#allocation1] sm:$0xff]  ;;  %v1678_v6 = vld [vmem:[#allocation13 + $0x38] sm:$0xff] }
  0x55   :  { %670 = vmatpush.bf16.msra.mxu0 %v1238_v22  ;;  %683 = vmatpush.bf16.msra.mxu1 %v1366_v25  ;;  %v194_v20 = vunpack.c.l.bf16 %v188_v15  ;;  %v699_v63 = vld [vmem:[#allocation1 + $0x9] sm:$0xff]  ;;  %v1655_v0 = vld [vmem:[#allocation11 + $0x80] sm:$0xff]  ;;  %v702_v4 = vpack.i.b16 %v698_v62, %v698_v62 }
  0x56   :  { %v705_v5 = vpack.i.b16 %v699_v63, %v699_v63 }
  0x57   :  { %646 = vmatpush.bf16.msrb.mxu2 %v1202_v44  ;;  %v1641_v44 = vld [vmem:[#allocation11 + $0x10] sm:$0xff]  ;;  %v704_v7 = vperm.slane %v702_v4, 0 }
  0x58   :  { %659 = vmatpush.bf16.msrb.mxu3 %v1330_v48  ;;  %v1640_v48 = vld [vmem:[#allocation11 + $0x8] sm:$0xff]  ;;  %v707_v8 = vperm.slane %v705_v5, 0 }
  0x59   :  { %671 = vmatpush.bf16.msra.mxu0 %v1222_v39  ;;  %684 = vmatpush.bf16.msra.mxu1 %v1350_v40  ;;  %v1651_v39 = vld [vmem:[#allocation11 + $0x60] sm:$0xff]  ;;  %v1642_v40 = vld [vmem:[#allocation11 + $0x18] sm:$0xff]  ;;  %v718_v15 = vunpack.c.l.bf16 %v704_v7 }
  0x5a   :  { %v719_v16 = vunpack.c.l.bf16 %v707_v8 }
  0x5b   :  { %647 = vmatpush.bf16.msrb.mxu2 %v1186_v57  ;;  %v1666_v57 = vld [vmem:[#allocation11 + $0xd8] sm:$0xff] }
  0x5c   :  { %660 = vmatpush.bf16.msrb.mxu3 %v1314_v61  ;;  %v1664_v61 = vld [vmem:[#allocation11 + $0xc8] sm:$0xff] }
  0x5d   :  { %672 = vmatpush.bf16.msra.mxu0 %v1206_v49  ;;  %685 = vmatpush.bf16.msra.mxu1 %v1334_v53  ;;  %v1648_v49 = vld [vmem:[#allocation11 + $0x48] sm:$0xff]  ;;  %v1647_v53 = vld [vmem:[#allocation11 + $0x40] sm:$0xff] }
  0x5f   :  { %648 = vmatpush.bf16.msrb.mxu2 %v1170_v9  ;;  %v1677_v9 = vld [vmem:[#allocation13 + $0x30] sm:$0xff] }
  0x60   :  { %661 = vmatpush.bf16.msrb.mxu3 %v1298_v10 }
  0x61   :  { %673 = vmatpush.bf16.msra.mxu0 %v1190_v1  ;;  %686 = vmatpush.bf16.msra.mxu1 %v1318_v2  ;;  %v1663_v1 = vld [vmem:[#allocation11 + $0xc0] sm:$0xff] }
  0x65   :  { %674 = vmatpush.bf16.msra.mxu0 %v1174_v11  ;;  %687 = vmatpush.bf16.msra.mxu1 %v1302_v12 }
  0xa5   :  { %v163_v17 = vpop.f32.mrf.mxu0 }
  0xa7   :  { %v176_v18 = vpop.f32.mrf.mxu1 }
  0xa8   :  { %v180_v19 = vpack.c.bf16 %v176_v18, %v163_v17 }
  0xaa   :  { %v192_v22 = vunpack.c.l.bf16 %v180_v19  ;;  %v193_v23 = vunpack.c.h.bf16 %v180_v19 }
  0xac   :  { %v196_v24 = vadd.f32 %v194_v20, %v192_v22  ;;  %v197_v25 = vadd.f32 %v195_v21, %v193_v23 }
  0xad   :  { %v165_v29 = vpop.f32.mrf.mxu0 }
  0xae   :  { %v201_v28 = vmax.f32 %v196_v24, 0.0  ;;  %v202_v26 = vmax.f32 %v197_v25, 0.0  ;;  %v700_v25 = vld [vmem:[#allocation1 + $0x12] sm:$0xff] }
  0xaf   :  { %v178_v30 = vpop.f32.mrf.mxu1 }
  0xb0   :  { %v203_v27 = vpack.c.bf16 %v201_v28, %v201_v28  ;;  %v204_v31 = vpack.c.bf16 %v202_v26, %v202_v26  ;;  %v701_v28 = vld [vmem:[#allocation1 + $0x1b] sm:$0xff] }
  0xb2   :  { %597 = vmatmul.bf16.vlgmr.msra.gmra.mxu2 %v203_v27  ;;  %610 = vmatmul.bf16.vlgmr.msra.gmra.mxu3 %v204_v31 }
  0xb3   :  { %623 = vmatmul.bf16.vlgmr.msrb.gmra.mxu0 %v203_v27  ;;  %636 = vmatmul.bf16.vlgmr.msrb.gmra.mxu1 %v204_v31 }
  0xb4   :  { %1000 = vmatpush.bf16.msra.mxu2 %v1646_v32  ;;  %1013 = vmatpush.bf16.msra.mxu3 %v1654_v33  ;;  %v708_v33 = vpack.i.b16 %v700_v25, %v700_v25 }
  0xb5   :  { %1026 = vmatpush.bf16.msrb.mxu0 %v1662_v42  ;;  %1039 = vmatpush.bf16.msrb.mxu1 %v1670_v43 }
  0xb8   :  { %1001 = vmatpush.bf16.msra.mxu2 %v1645_v34  ;;  %1014 = vmatpush.bf16.msra.mxu3 %v1653_v35  ;;  %v711_v34 = vpack.i.b16 %v701_v28, %v701_v28  ;;  %v710_v35 = vperm.slane %v708_v33, 0 }
  0xb9   :  { %1027 = vmatpush.bf16.msrb.mxu0 %v1661_v46  ;;  %1040 = vmatpush.bf16.msrb.mxu1 %v1669_v47 }
  0xba   :  { %v720_v42 = vunpack.c.l.bf16 %v710_v35 }
  0xbc   :  { %1002 = vmatpush.bf16.msra.mxu2 %v1644_v36  ;;  %1015 = vmatpush.bf16.msra.mxu3 %v1652_v37  ;;  %v713_v36 = vperm.slane %v711_v34, 0 }
  0xbd   :  { %1028 = vmatpush.bf16.msrb.mxu0 %v1660_v50  ;;  %1041 = vmatpush.bf16.msrb.mxu1 %v1668_v51 }
  0xbe   :  { %v721_v43 = vunpack.c.l.bf16 %v713_v36 }
  0xc0   :  { %1003 = vmatpush.bf16.msra.mxu2 %v1643_v38  ;;  %1016 = vmatpush.bf16.msra.mxu3 %v1651_v39 }
  0xc1   :  { %1029 = vmatpush.bf16.msrb.mxu0 %v1659_v54  ;;  %1042 = vmatpush.bf16.msrb.mxu1 %v1667_v55 }
  0xc2   :  { %649 = vmatmul.bf16.vlgmr.msrb.gmra.mxu2 %v203_v27  ;;  %662 = vmatmul.bf16.vlgmr.msrb.gmra.mxu3 %v204_v31 }
  0xc3   :  { %675 = vmatmul.bf16.vlgmr.msra.gmra.mxu0 %v203_v27  ;;  %688 = vmatmul.bf16.vlgmr.msra.gmra.mxu1 %v204_v31 }
  0xc4   :  { %1004 = vmatpush.bf16.msra.mxu2 %v1642_v40  ;;  %1017 = vmatpush.bf16.msra.mxu3 %v1650_v41 }
  0xc5   :  { %1030 = vmatpush.bf16.msrb.mxu0 %v1658_v56  ;;  %1043 = vmatpush.bf16.msrb.mxu1 %v1666_v57  ;;  %v1676_v56 = vld [vmem:[#allocation13 + $0x28] sm:$0xff]  ;;  %v1675_v57 = vld [vmem:[#allocation13 + $0x20] sm:$0xff] }
  0xc8   :  { %1005 = vmatpush.bf16.msra.mxu2 %v1641_v44  ;;  %1018 = vmatpush.bf16.msra.mxu3 %v1649_v45 }
  0xc9   :  { %1031 = vmatpush.bf16.msrb.mxu0 %v1657_v58  ;;  %1044 = vmatpush.bf16.msrb.mxu1 %v1665_v59  ;;  %v1674_v58 = vld [vmem:[#allocation13 + $0x18] sm:$0xff]  ;;  %v1673_v59 = vld [vmem:[#allocation13 + $0x10] sm:$0xff] }
  0xcc   :  { %1006 = vmatpush.bf16.msra.mxu2 %v1640_v48  ;;  %1019 = vmatpush.bf16.msra.mxu3 %v1648_v49 }
  0xcd   :  { %1032 = vmatpush.bf16.msrb.mxu0 %v1656_v60  ;;  %1045 = vmatpush.bf16.msrb.mxu1 %v1664_v61  ;;  %v1672_v60 = vld [vmem:[#allocation13 + $0x8] sm:$0xff]  ;;  %v1671_v61 = vld [vmem:[#allocation13] sm:$0xff] }
  0xd0   :  { %1007 = vmatpush.bf16.msra.mxu2 %v1639_v52  ;;  %1020 = vmatpush.bf16.msra.mxu3 %v1647_v53 }
  0xd1   :  { %1033 = vmatpush.bf16.msrb.mxu0 %v1655_v0  ;;  %1046 = vmatpush.bf16.msrb.mxu1 %v1663_v1  ;;  %v1691_v0 = vld [vmem:[%s2007_s6] ss:$0 sm:$0xff]  ;;  %s1908_s6 = smov [#allocation14]  }
  0xd2   :  { %s1142_s23 = sshll.u32 %s1908_s6, 4  ;;  %s1143_s23 = int_to_ptr.vmem [resolvable:$true] %s1142_s23 }
  0xd4   :  { %1122 = vmatpush.bf16.msrb.mxu2 %v1678_v6 }
  0xd8   :  { %1123 = vmatpush.bf16.msrb.mxu2 %v1677_v9 }
  0xdc   :  { %1124 = vmatpush.bf16.msrb.mxu2 %v1676_v56 }
  0xe0   :  { %1125 = vmatpush.bf16.msrb.mxu2 %v1675_v57 }
  0xe4   :  { %1126 = vmatpush.bf16.msrb.mxu2 %v1674_v58 }
  0xe8   :  { %1127 = vmatpush.bf16.msrb.mxu2 %v1673_v59 }
  0xec   :  { %1128 = vmatpush.bf16.msrb.mxu2 %v1672_v60 }
  0xf0   :  { %1129 = vmatpush.bf16.msrb.mxu2 %v1671_v61 }
 0x130   :  { %v624_v2 = vpop.f32.mrf.mxu0  ;;  %v637_v3 = vpop.f32.mrf.mxu1 }
 0x131   :  { %v638_v12 = vadd.f32 %v637_v3, %v624_v2 }
 0x135   :  { %v598_v10 = vpop.f32.mrf.mxu2  ;;  %v611_v11 = vpop.f32.mrf.mxu3 }
 0x136   :  { %v612_v13 = vadd.f32 %v611_v11, %v598_v10 }
 0x138   :  { %v693_v14 = vpack.c.bf16 %v638_v12, %v612_v13  ;;  %v626_v17 = vpop.f32.mrf.mxu0  ;;  %v639_v18 = vpop.f32.mrf.mxu1  ;;  %v1692_v13 = vld [vmem:[%s2009_s8] ss:$0 sm:$0xff] }
 0x13a   :  { %v714_v19 = vunpack.c.l.bf16 %v693_v14  ;;  %v715_v20 = vunpack.c.h.bf16 %v693_v14 }
 0x13c   :  { %v722_v21 = vadd.f32 %v718_v15, %v714_v19  ;;  %v723_v22 = vadd.f32 %v719_v16, %v715_v20 }
 0x13d   :  { %v600_v23 = vpop.f32.mrf.mxu2  ;;  %v613_v24 = vpop.f32.mrf.mxu3 }
 0x13e   :  { %v732_v26 = vmax.f32 %v722_v21, 0.0  ;;  %v733_v29 = vmax.f32 %v723_v22, 0.0 }
 0x140   :  { %v676_v30 = vpop.f32.mrf.mxu0  ;;  %v689_v27 = vpop.f32.mrf.mxu1  ;;  %v736_v31 = vpack.c.bf16 %v732_v26, %v732_v26  ;;  %v737_v32 = vpack.c.bf16 %v733_v29, %v733_v29 }
 0x141   :  { %v690_v39 = vadd.f32 %v689_v27, %v676_v30 }
 0x142   :  { %1008 = vmatmul.bf16.vlgmr.msra.gmra.mxu2 %v736_v31  ;;  %1021 = vmatmul.bf16.vlgmr.msra.gmra.mxu3 %v737_v32 }
 0x145   :  { %v650_v37 = vpop.f32.mrf.mxu2  ;;  %v663_v38 = vpop.f32.mrf.mxu3 }
 0x146   :  { %v664_v40 = vadd.f32 %v663_v38, %v650_v37 }
 0x148   :  { %v694_v41 = vpack.c.bf16 %v690_v39, %v664_v40  ;;  %v678_v44 = vpop.f32.mrf.mxu0  ;;  %v691_v45 = vpop.f32.mrf.mxu1 }
 0x14a   :  { %v716_v46 = vunpack.c.l.bf16 %v694_v41  ;;  %v717_v47 = vunpack.c.h.bf16 %v694_v41 }
 0x14c   :  { %v724_v48 = vadd.f32 %v720_v42, %v716_v46  ;;  %v725_v49 = vadd.f32 %v721_v43, %v717_v47 }
 0x14d   :  { %v652_v50 = vpop.f32.mrf.mxu2  ;;  %v665_v51 = vpop.f32.mrf.mxu3 }
 0x14e   :  { %v734_v52 = vmax.f32 %v724_v48, 0.0  ;;  %v735_v53 = vmax.f32 %v725_v49, 0.0 }
 0x150   :  { %v738_v54 = vpack.c.bf16 %v734_v52, %v734_v52  ;;  %v739_v55 = vpack.c.bf16 %v735_v53, %v735_v53 }
 0x152   :  { %1034 = vmatmul.bf16.vlgmr.msrb.gmra.mxu0 %v738_v54  ;;  %1047 = vmatmul.bf16.vlgmr.msrb.gmra.mxu1 %v739_v55 }
 0x1c5   :  { %v1009_v62 = vpop.f32.mrf.mxu2  ;;  %v1022_v63 = vpop.f32.mrf.mxu3 }
 0x1c6   :  { %v1010_v1 = vadd.f32 %v1691_v0, %v1009_v62 }
 0x1c8   :  { %v1023_v4 = vadd.f32 %v1022_v63, %v1010_v1 }
 0x1cd   :  { %v1011_v2 = vpop.f32.mrf.mxu2  ;;  %v1024_v3 = vpop.f32.mrf.mxu3 }
 0x1cf   :  { %v1035_v5 = vpop.f32.mrf.mxu0  ;;  %v1048_v6 = vpop.f32.mrf.mxu1 }
 0x1d0   :  { %v1036_v7 = vadd.f32 %v1035_v5, %v1023_v4 }
 0x1d2   :  { %v1049_v8 = vadd.f32 %v1048_v6, %v1036_v7 }
 0x1d4   :  { %1693 = vtanh.f32 %v1049_v8 }
 0x1d7   :  { %v1037_v9 = vpop.f32.mrf.mxu0  ;;  %v1050_v10 = vpop.f32.mrf.mxu1 }
 0x1da   :  { %v1694_v11 = vpop.eup %1693 }
 0x1db   :  { %v1053_v12 = vpack.c.bf16 %v1694_v11, %v1694_v11 }
 0x1dd   :  { %1130 = vmatmul.bf16.vlgmr.msrb.gmra.mxu2 %v1053_v12 }
 0x260   :  { %v1131_v14 = vpop.f32.mrf.mxu2 }
 0x261   :  { %v1132_v15 = vadd.f32 %v1692_v13, %v1131_v14 }
 0x263   :  { %v1135_v16 = vpack.c.bf16 %v1132_v15, %v1132_v15 }
 0x265   :  { %1136 = vst [vmem:[#allocation14] sm:$0xf] %v1135_v16 }
 0x266   :  { %1147 = dma.vmem_to_hbm [thread:$0]  %s1143_s23, 64, %s1145_s26, [#allocation4]  }
 0x268   :  { %v1133_v17 = vpop.f32.mrf.mxu2 }
 0x269   :  { %1895 = dma.done.wait [#allocation4], 64  }
 0x26a   :  { %1896 = vsyncadd [#allocation4], 4294967232 }
 0x26b   :  { %1152 = vsyncpa [#allocation3], 1 }
 0x26c   :  { %1153 = vsyncpa [#allocation6], 1 }
 0x26d   :  { %1154 = vsyncpa [#allocation9], 1 }
 0x26e   :  { %1155 = vsyncpa [#allocation12], 1 }
 0x26f   :  { %1156 = vsyncpa [#allocation4], 1 }

</bundles_post_ra>
